<compile_context>
chip_gen: v5e
topology: v5e:2x2
jax: 0.10.0
libtpu: 0.0.40
codegen_flags: <defaults>
</compile_context>

<pallas_src>
import functools

import jax
import jax.numpy as jnp
from jax.experimental import pallas as pl
from jax.experimental.pallas import tpu as pltpu

_LANE = 128      # lane width of a vreg
_SUBLANE = 8     # f32 sublane tile


def _round_up(x, m):
    return ((x + m - 1) // m) * m


def _predictor_kernel(x_ref, w_ref, b_ref, out_ref):
    # x:   (TILE_N, C)        operand dtype (bf16 by default)
    # w:   (C, OUT_pad)       fused [cls | pad | bbox | pad] weight, resident
    # b:   (1, OUT_pad)       fused bias, f32, resident
    # out: (TILE_N, OUT_pad)
    acc = jnp.dot(x_ref[...], w_ref[...], preferred_element_type=jnp.float32)
    out_ref[...] = (acc + b_ref[...]).astype(out_ref.dtype)


def prepare_fast_rcnn_predictor_params(w_cls, b_cls, w_bbox, b_bbox, *,
                                       operand_dtype=jnp.bfloat16):
    """One-time parameter prep (call at model init, NOT every forward).

    w_cls:  (num_classes, C)      b_cls:  (num_classes,)
    w_bbox: (num_classes*4, C)    b_bbox: (num_classes*4,)

    Fused, lane-aligned layout:
        cols [0, num_classes)                          -> cls head
        cols [bbox_off, bbox_off + 4*num_classes)      -> bbox head
    with bbox_off = round_up(num_classes, 128), so both output slices in the
    wrapper start on a 128-lane boundary.  Everything else is zero padding.

    Returns (w_fused (C, OUT_pad) in operand_dtype, b_fused (1, OUT_pad) f32,
             num_classes).
    """
    num_classes, c = w_cls.shape
    bbox_off = _round_up(num_classes, _LANE)
    out_pad = bbox_off + _round_up(num_classes * 4, _LANE)

    w_fused = jnp.zeros((c, out_pad), jnp.float32)
    w_fused = w_fused.at[:, :num_classes].set(w_cls.T.astype(jnp.float32))
    w_fused = w_fused.at[:, bbox_off:bbox_off + num_classes * 4].set(
        w_bbox.T.astype(jnp.float32))

    b_fused = jnp.zeros((1, out_pad), jnp.float32)
    b_fused = b_fused.at[0, :num_classes].set(b_cls.astype(jnp.float32))
    b_fused = b_fused.at[0, bbox_off:bbox_off + num_classes * 4].set(
        b_bbox.astype(jnp.float32))

    if operand_dtype is not None:
        # bf16 default: halves weight (and x) HBM traffic and hits the MXU's
        # native rate; accumulation stays f32 in the kernel.
        w_fused = w_fused.astype(operand_dtype)
    return w_fused, b_fused, num_classes


@functools.partial(jax.jit, static_argnames=("num_classes", "tile_n"))
def fast_rcnn_predictor(x, w_fused, b_fused, *, num_classes, tile_n=512):
    """Pallas implementation of FastRCNNPredictor.forward.

    x: (N, C) or (N, C, 1, 1).
    w_fused / b_fused: from prepare_fast_rcnn_predictor_params.
    Returns (scores (N, num_classes), bbox_deltas (N, num_classes*4)),
    both in x's original dtype.
    """
    if x.ndim == 4:
        assert x.shape[2] == 1 and x.shape[3] == 1, "spatial dims must be [1, 1]"
    out_dtype = x.dtype                       # outputs keep the activation dtype
    x2d = x.reshape(x.shape[0], -1)           # flatten(start_dim=1)
    n, c = x2d.shape
    out_pad = w_fused.shape[1]
    bbox_off = _round_up(num_classes, _LANE)

    # Match MXU operand dtype to the fused weight (bf16 by default).  Under
    # jit this convert fuses into the upstream producer of x.
    if x2d.dtype != w_fused.dtype:
        x2d = x2d.astype(w_fused.dtype)

    # Row tile: a multiple of the sublane (8).  No wrapper-side padding of x;
    # the ragged last block is handled by Pallas (masked output stores) and
    # only the lane-aligned column slices below are returned.
    n_sub = _round_up(max(n, 1), _SUBLANE)
    tile = min(tile_n, n_sub)
    if n_sub >= 2 * _SUBLANE:
        # Keep at least 2 grid steps so the "parallel" axis can shard across
        # both v7x TensorCores (no-op on single-TC v5e/v6e).
        tile = min(tile, _round_up(pl.cdiv(n_sub, 2), _SUBLANE))
    grid = (pl.cdiv(n, tile),)

    op_bytes = jnp.dtype(w_fused.dtype).itemsize
    cost = pl.CostEstimate(
        flops=2 * n * c * out_pad,
        transcendentals=0,
        bytes_accessed=(n * c * op_bytes                         # x
                        + c * out_pad * op_bytes                 # fused weight
                        + out_pad * 4                            # bias (f32)
                        + n * out_pad * jnp.dtype(out_dtype).itemsize),  # out
    )

    out = pl.pallas_call(
        _predictor_kernel,
        out_shape=jax.ShapeDtypeStruct((n, out_pad), out_dtype),
        grid_spec=pltpu.PrefetchScalarGridSpec(
            num_scalar_prefetch=0,
            grid=grid,
            in_specs=[
                pl.BlockSpec((tile, c), lambda i: (i, 0)),       # x tile (pipelined)
                pl.BlockSpec((c, out_pad), lambda i: (0, 0)),    # weight (resident)
                pl.BlockSpec((1, out_pad), lambda i: (0, 0)),    # bias   (resident)
            ],
            out_specs=pl.BlockSpec((tile, out_pad), lambda i: (i, 0)),
        ),
        compiler_params=pltpu.CompilerParams(
            dimension_semantics=("parallel",),
        ),
        cost_estimate=cost,
    )(x2d, w_fused, b_fused)

    scores = out[:, :num_classes]                                 # lane offset 0
    bbox_deltas = out[:, bbox_off:bbox_off + num_classes * 4]     # lane-aligned offset
    return scores, bbox_deltas


def _init_params(key, in_channels, num_classes):
    """Deterministic synthetic init matching nn.Linear shapes."""
    k1, k2, k3, k4 = jax.random.split(key, 4)
    bound = 1.0 / jnp.sqrt(in_channels)
    w_cls = jax.random.uniform(k1, (num_classes, in_channels),
                               jnp.float32, -bound, bound)
    b_cls = jax.random.uniform(k2, (num_classes,), jnp.float32, -bound, bound)
    w_bbox = jax.random.uniform(k3, (num_classes * 4, in_channels),
                                jnp.float32, -bound, bound)
    b_bbox = jax.random.uniform(k4, (num_classes * 4,),
                                jnp.float32, -bound, bound)
    return w_cls, b_cls, w_bbox, b_bbox


if __name__ == "__main__":
    key = jax.random.PRNGKey(0)
    kx, kp, kx2 = jax.random.split(key, 3)

    in_channels = 32
    num_classes = 4
    w_cls, b_cls, w_bbox, b_bbox = _init_params(kp, in_channels, num_classes)

    # One-time weight prep (bf16 MXU operands by default).
    w_fused, b_fused, nc = prepare_fast_rcnn_predictor_params(
        w_cls, b_cls, w_bbox, b_bbox)

    # --- Case 1: NCHW input with spatial (1, 1), tiny batch (single grid step)
    batch = 2
    x = jax.random.normal(kx, (batch, in_channels, 1, 1), jnp.float32)
    scores, bbox_deltas = fast_rcnn_predictor(x, w_fused, b_fused, num_classes=nc)
    jax.block_until_ready((scores, bbox_deltas))

    x2d = x.reshape(batch, -1)
    scores_ref = x2d @ w_cls.T + b_cls
    bbox_ref = x2d @ w_bbox.T + b_bbox
    assert scores.shape == (batch, num_classes)
    assert bbox_deltas.shape == (batch, num_classes * 4)
    # bf16 operands (f32 accumulation) -> loosened tolerance vs f32 reference.
    assert jnp.allclose(scores, scores_ref, atol=5e-2, rtol=5e-2)
    assert jnp.allclose(bbox_deltas, bbox_ref, atol=5e-2, rtol=5e-2)

    # --- Case 2: 2-D input, non-tile-aligned N -> multi-step grid + ragged
    # last block (exercises the no-pad / cdiv path).
    n2 = 100
    x_big = jax.random.normal(kx2, (n2, in_channels), jnp.float32)
    scores2, bbox2 = fast_rcnn_predictor(x_big, w_fused, b_fused, num_classes=nc)
    jax.block_until_ready((scores2, bbox2))

    scores2_ref = x_big @ w_cls.T + b_cls
    bbox2_ref = x_big @ w_bbox.T + b_bbox
    assert scores2.shape == (n2, num_classes)
    assert bbox2.shape == (n2, num_classes * 4)
    assert jnp.allclose(scores2, scores2_ref, atol=5e-2, rtol=5e-2)
    assert jnp.allclose(bbox2, bbox2_ref, atol=5e-2, rtol=5e-2)

    print("KERNEL_OK")
</pallas_src>

<mosaic_0001>
module attributes {stable_mosaic.version = 11 : i64} {
  func.func @_predictor_kernel(%arg0: i32, %arg1: memref<8x32xbf16, #tpu.memory_space<vmem>>, %arg2: memref<32x256xbf16, #tpu.memory_space<vmem>>, %arg3: memref<1x256xf32, #tpu.memory_space<vmem>>, %arg4: memref<8x256xf32, #tpu.memory_space<vmem>>) attributes {dimension_semantics = [#tpu.dimension_semantics<parallel>], iteration_bounds = array<i64: 1>, scalar_prefetch = 0 : i64, scratch_operands = 0 : i64, tpu.core_type = #tpu.core_type<tc>, window_params = [{transform_indices = @transform_0, window_bounds = array<i64: 8, 32>}, {pipeline_mode = #tpu.pipeline_mode<synchronous>, transform_indices = @transform_1, window_bounds = array<i64: 32, 256>}, {pipeline_mode = #tpu.pipeline_mode<synchronous>, transform_indices = @transform_2, window_bounds = array<i64: 1, 256>}, {transform_indices = @transform_3, window_bounds = array<i64: 8, 256>}]} {
    %c0 = arith.constant 0 : index
    %c0_0 = arith.constant 0 : index
    %0 = vector.load %arg1[%c0, %c0_0] : memref<8x32xbf16, #tpu.memory_space<vmem>>, vector<8x32xbf16>
    %c0_1 = arith.constant 0 : index
    %c0_2 = arith.constant 0 : index
    %1 = vector.load %arg2[%c0_1, %c0_2] : memref<32x256xbf16, #tpu.memory_space<vmem>>, vector<32x256xbf16>
    %cst = arith.constant dense<0.000000e+00> : vector<8x256xf32>
    %2 = tpu.matmul %0, %1, %cst {dimension_numbers = #tpu.dot_dimension_numbers<[1], [0], [0], [1], [0, 0, 1, 1], [], []>} : vector<8x32xbf16>, vector<32x256xbf16>, vector<8x256xf32> -> vector<8x256xf32>
    %c0_3 = arith.constant 0 : index
    %c0_4 = arith.constant 0 : index
    %3 = vector.load %arg3[%c0_3, %c0_4] : memref<1x256xf32, #tpu.memory_space<vmem>>, vector<1x256xf32>
    %4 = vector.broadcast %3 : vector<1x256xf32> to vector<8x256xf32>
    %5 = arith.addf %2, %4 : vector<8x256xf32>
    %c0_5 = arith.constant 0 : index
    %c0_6 = arith.constant 0 : index
    %6 = vector.load %arg4[%c0_5, %c0_6] : memref<8x256xf32, #tpu.memory_space<vmem>>, vector<8x256xf32>
    tpu.vector_store %arg4[%c0_5, %c0_6], %5 {strides = array<i32>} : memref<8x256xf32, #tpu.memory_space<vmem>>, vector<8x256xf32>,
    return
  }
  func.func @transform_0(%arg0: i32) -> (i32, i32) {
    %c0_i32 = arith.constant 0 : i32
    %c0_i32_0 = arith.constant 0 : i32
    return %arg0, %c0_i32 : i32, i32
  }
  func.func @transform_1(%arg0: i32) -> (i32, i32) {
    %c0_i32 = arith.constant 0 : i32
    %c0_i32_0 = arith.constant 0 : i32
    %c0_i32_1 = arith.constant 0 : i32
    return %c0_i32, %c0_i32_0 : i32, i32
  }
  func.func @transform_2(%arg0: i32) -> (i32, i32) {
    %c0_i32 = arith.constant 0 : i32
    %c0_i32_0 = arith.constant 0 : i32
    %c0_i32_1 = arith.constant 0 : i32
    return %c0_i32, %c0_i32_0 : i32, i32
  }
  func.func @transform_3(%arg0: i32) -> (i32, i32) {
    %c0_i32 = arith.constant 0 : i32
    %c0_i32_0 = arith.constant 0 : i32
    return %arg0, %c0_i32 : i32, i32
  }
}

</mosaic_0001>

<bundles_post_ra>
// kernel: fast_rcnn_predictor.1
= control target key start
LH: loop header
LB: loop body
LE: loop exit
PB: predicated region body
PF: predicated region fallthrough
CT: control target
= control target key end

     0   :  { %8 = vsyncpa [#allocation3], 0  ;;  %s221_s15 = smov [#allocation2]   ;;  %s222_s17 = smov 128   ;;  %s265_s0 = inlined_call_operand.vmem [shape: bf16[2,32], index: 0, kind: input, shape index: {}]   ;;  %s266_s1 = inlined_call_operand.hbm [shape: bf16[32,256], index: 1, kind: input, shape index: {}]   ;;  %s267_s2 = inlined_call_operand.vmem [shape: f32[1,256], index: 2, kind: input, shape index: {}]   ;;  %s268_s3 = inlined_call_operand.vmem [shape: f32[2,256], index: 3, kind: output, shape index: {}]  }
   0x1   :  { %s15_s14 = sshll.u32 %s266_s1, 4  ;;  %s17_s16 = sshll.u32 %s221_s15, 4  ;;  %s16_s14 = int_to_ptr.hbm [resolvable:$true] %s15_s14  ;;  %s18_s16 = int_to_ptr.vmem [resolvable:$true] %s17_s16 }
   0x2   :  { %s223_s18 = smov 8  }
   0x3   :  { %23 = dma.hbm_to_vmem [thread:$0]  %s16_s14, 512, %s18_s16, [#allocation3], %s222_s17, %s222_s17, %s223_s18  }
   0x4   :  { %219 = dma.done.wait [#allocation3], 512  }
   0x5   :  { %220 = vsyncadd [#allocation3], 4294966784  ;;  %v180_v0 = vld [vmem:[#allocation2 + $0x10] sm:$0xf]  ;;  %v191_v1 = vld [vmem:[#allocation2 + $0x14] sm:$0xf0] }
   0x6   :  { %v190_v2 = vld [vmem:[#allocation2 + $0x14] sm:$0xf]  ;;  %v181_v3 = vor.u32 %v191_v1, %v180_v0  ;;  %v182_v4 = vld [vmem:[#allocation2 + $0x18] sm:$0xf0]  ;;  %v172_v5 = vld [vmem:[#allocation2] sm:$0xf] }
   0x7   :  { %v189_v6 = vld [vmem:[#allocation2 + $0x4] sm:$0xf0]  ;;  %v185_v7 = vor.u32 %v190_v2, %v182_v4  ;;  %v188_v8 = vld [vmem:[#allocation2 + $0x4] sm:$0xf]  ;;  %v174_v9 = vld [vmem:[#allocation2 + $0x8] sm:$0xf0] }
   0x8   :  { %v31_v10 = vld [vmem:[%s265_s0] sm:$0x1]  ;;  %86 = vmatpush.bf16.msra.mxu0 %v181_v3  ;;  %v173_v11 = vor.u32 %v189_v6, %v172_v5  ;;  %v32_v12 = vld [vmem:[%s265_s0 + $0x1] sm:$0x1]  ;;  %v33_v13 = vld [vmem:[%s265_s0 + $0x2] sm:$0x1]  ;;  %v177_v14 = vor.u32 %v188_v8, %v174_v9 }
   0x9   :  { %99 = vmatpush.bf16.msra.mxu1 %v185_v7  ;;  %v34_v15 = vld [vmem:[%s265_s0 + $0x3] sm:$0x1]  ;;  %46 = vst [vmem:[#allocation1] ss:$9 sm:$0xff] %v31_v10  ;;  %vm77_vm0 = vcmask 261120   ;;  %vm109_vm1 = vcmask 1041408  }
   0xa   :  { %49 = vst [vmem:[#allocation1 + $0x1] ss:$9 sm:$0xff] %v32_v12  ;;  %v39_v17 = vld [vmem:[%s267_s2] sm:$0x3] }
   0xb   :  { %52 = vst [vmem:[#allocation1 + $0x2] ss:$9 sm:$0xff] %v33_v13  ;;  %v41_v18 = vperm.slane %v39_v17, 0  ;;  %v42_v19 = vperm.slane %v39_v17, 1 }
   0xc   :  { %87 = vmatpush.bf16.msra.mxu0 %v173_v11  ;;  %55 = vst [vmem:[#allocation1 + $0x3] ss:$9 sm:$0xff] %v34_v15 }
   0xd   :  { %100 = vmatpush.bf16.msra.mxu1 %v177_v14 }
  0x13   :  { %v56_v16 = vld [vmem:[#allocation1] sm:$0xff] }
  0x14   :  { %186 = vmatmul.msk.bf16.vlgmr.msra.gmra.mxu0 %vm77_vm0, %v56_v16  ;;  %187 = vmatmul.msk.bf16.vlgmr.msra.gmra.mxu1 %vm77_vm0, %v56_v16 }
  0x91   :  { %v89_v20 = vpop.f32.mrf.mxu0  ;;  %v102_v21 = vpop.f32.mrf.mxu1 }
  0x92   :  { %v90_v22 = vadd.f32 %v89_v20, %v41_v18  ;;  %v103_v23 = vadd.f32 %v102_v21, %v42_v19 }
  0x94   :  { %v108_v24 = vrot.slane %v103_v23, 6 }
  0x96   :  { %v110_v25 = vsel %vm109_vm1, %v90_v22, %v108_v24 }
  0x97   :  { %124 = vst [vmem:[#allocation4] sm:$0xf] %v110_v25 }
  0x99   :  { %v91_v26 = vpop.f32.mrf.mxu0  ;;  %v104_v27 = vpop.f32.mrf.mxu1 }
  0x9e   :  { %v146_v28 = vld [vmem:[#allocation4] sm:$0xf] }
  0x9f   :  { %147 = vst [vmem:[%s268_s3] sm:$0xf] %v146_v28 }
  0xa0   :  { %165 = vsyncpa [#allocation3], 1 }

</bundles_post_ra>
